<compile_context>
chip_gen: v7x
topology: tpu7x:2x2x1
jax: 0.10.0
libtpu: 0.0.40
codegen_flags: <defaults>
</compile_context>

<pallas_src>
import math

import jax
import jax.numpy as jnp
from jax.experimental import pallas as pl
from jax.experimental.pallas import tpu as pltpu


def _round_up(a, m):
    return ((a + m - 1) // m) * m


def cond_linear_kernel(y_ref, wy_ref, c_ref, o_ref):
    tm, h = o_ref.shape
    r = c_ref.shape[0]
    # o = y @ Wy + c[row % B]   (c = x @ Wx + b, precomputed outside, f32)
    acc = jnp.dot(y_ref[...], wy_ref[...], preferred_element_type=jnp.float32)
    # r is a multiple of B and divides tm; every tile starts on a multiple of B,
    # so the (row % B) phase is aligned and a tile-aligned reshape broadcasts c.
    acc = acc.reshape(tm // r, r, h) + c_ref[...][None, :, :]
    o_ref[...] = acc.reshape(tm, h).astype(o_ref.dtype)


def conditional_module_forward(x, y, W, b, *, tm_target=1024,
                               vmem_budget_bytes=20 * 1024 * 1024):
    """x: (B, Dx); y: (..., B, Dy); W: (Dx+Dy, H); b: (H,). Returns (..., B, H)."""
    B, Dx = x.shape
    Dy = y.shape[-1]
    H = W.shape[-1]
    assert y.shape[-2] == B, "x and y must share the -2'th (batch) dimension"

    out_dtype = y.dtype                        # match input dtype (no silent upcast)
    batch_shape = y.shape[:-1]
    y_flat = y.reshape(-1, Dy)                 # contiguous flatten: free view
    N = y_flat.shape[0]                        # always a multiple of B

    # ---- fold concat + x-half of the matmul into a tiny precomputation ----
    c = (jnp.dot(x.astype(jnp.float32), W[:Dx].astype(jnp.float32),
                 preferred_element_type=jnp.float32)
         + b.astype(jnp.float32))              # (B, H) f32
    Wy = W[Dx:].astype(out_dtype)              # (Dy, H), resident in VMEM

    # ---- row tiling: tm multiple of lcm(8, B) (sublane + batch-phase align) ----
    step = (8 * B) // math.gcd(8, B)
    y_isz = jnp.dtype(y_flat.dtype).itemsize
    o_isz = jnp.dtype(out_dtype).itemsize
    w_isz = jnp.dtype(Wy.dtype).itemsize
    dy_l = _round_up(Dy, 128)                  # lane-padded widths in VMEM
    h_l = _round_up(H, 128)

    def _vmem_bytes(t):
        return (2 * t * dy_l * y_isz           # double-buffered y stream
                + 2 * t * h_l * o_isz          # double-buffered out stream
                + 2 * t * h_l * 4              # f32 accumulator + reshape temp
                + 2 * _round_up(Dy, 8) * h_l * w_isz      # resident Wy
                + 2 * _round_up(step, 8) * h_l * 4)        # resident c rows

    if N <= step:
        tm = N                                 # single full-extent tile
    else:
        tm = max(step, (tm_target // step) * step)
        tm = min(tm, _round_up(N, step))
        while tm > step and _vmem_bytes(tm) > vmem_budget_bytes:
            tm = max(step, ((tm // 2) // step) * step)
        if tm >= N:                            # guarantee >= 2 grid steps (v7x megacore)
            half = _round_up((N + 1) // 2, step)
            if half < N:
                tm = half

    R = math.gcd(tm, step)                     # multiple of B, divides tm
    c_rep = jnp.tile(c, (R // B, 1))           # (R, H) f32 — tiny, resident

    grid = (pl.cdiv(N, tm),)                   # ragged last tile -> masked stores
    cost = pl.CostEstimate(
        flops=2 * N * Dy * H,
        transcendentals=0,
        bytes_accessed=(N * Dy * y_isz + N * H * o_isz
                        + Dy * H * w_isz + R * H * 4),
    )
    vmem_limit = max(16 * 1024 * 1024,
                     min(_vmem_bytes(tm) + 8 * 1024 * 1024, 64 * 1024 * 1024))

    out_flat = pl.pallas_call(
        cond_linear_kernel,
        out_shape=jax.ShapeDtypeStruct((N, H), out_dtype),
        grid=grid,
        in_specs=[
            pl.BlockSpec((tm, Dy), lambda i: (i, 0)),   # streamed y rows (pipelined)
            pl.BlockSpec((Dy, H), lambda i: (0, 0)),    # resident weights
            pl.BlockSpec((R, H), lambda i: (0, 0)),     # resident conditional rows
        ],
        out_specs=pl.BlockSpec((tm, H), lambda i: (i, 0)),
        compiler_params=pltpu.CompilerParams(
            dimension_semantics=("parallel",),          # megacore sharding on v7x
            vmem_limit_bytes=vmem_limit,
        ),
        cost_estimate=cost,
    )(y_flat, Wy, c_rep)

    return out_flat.reshape(*batch_shape, H)


def _reference(x, y, W, b):
    """Pure-JAX mirror of the PyTorch forward."""
    B, Dx = x.shape
    x_exp = jnp.broadcast_to(x, (*y.shape[:-2], B, Dx))
    z = jnp.concatenate([x_exp, y], axis=-1)
    batch_shape = z.shape[:-1]
    return (z.reshape(-1, z.shape[-1]) @ W + b).reshape(*batch_shape, -1)


if __name__ == "__main__":
    key = jax.random.PRNGKey(0)

    # ---- test 1: tiny single-tile case (extra batch dim = 2, B=4, Dx=Dy=8, H=128) ----
    k_x, k_y, k_w, k_b = jax.random.split(key, 4)
    B, Dx, Dy, H = 4, 8, 8, 128
    x = jax.random.normal(k_x, (B, Dx), dtype=jnp.float32)
    y = jax.random.normal(k_y, (2, B, Dy), dtype=jnp.float32)
    W = jax.random.normal(k_w, (Dx + Dy, H), dtype=jnp.float32) * 0.1
    b = jax.random.normal(k_b, (H,), dtype=jnp.float32) * 0.1

    out = jax.block_until_ready(conditional_module_forward(x, y, W, b))
    ref = _reference(x, y, W, b)
    assert out.shape == (2, B, H), out.shape
    assert jnp.allclose(out, ref, atol=1e-5, rtol=1e-5), "mismatch vs reference (test 1)"

    # ---- test 2: multi-tile grid with a ragged last tile and H not a multiple
    # of 128 (exercises the cdiv grid / masked stores / in-kernel c broadcast) ----
    k_x2, k_y2, k_w2, k_b2 = jax.random.split(jax.random.PRNGKey(1), 4)
    B2, Dx2, Dy2, H2 = 4, 8, 8, 96
    x2 = jax.random.normal(k_x2, (B2, Dx2), dtype=jnp.float32)
    y2 = jax.random.normal(k_y2, (3, 5, B2, Dy2), dtype=jnp.float32)   # N = 60
    W2 = jax.random.normal(k_w2, (Dx2 + Dy2, H2), dtype=jnp.float32) * 0.1
    b2 = jax.random.normal(k_b2, (H2,), dtype=jnp.float32) * 0.1

    out2 = jax.block_until_ready(conditional_module_forward(x2, y2, W2, b2))
    ref2 = _reference(x2, y2, W2, b2)
    assert out2.shape == (3, 5, B2, H2), out2.shape
    assert jnp.allclose(out2, ref2, atol=1e-5, rtol=1e-5), "mismatch vs reference (test 2)"

    print("KERNEL_OK")
</pallas_src>

<mosaic_0001>
module attributes {stable_mosaic.version = 11 : i64} {
  func.func @cond_linear_kernel(%arg0: i32, %arg1: memref<8x8xf32, #tpu.memory_space<vmem>>, %arg2: memref<8x128xf32, #tpu.memory_space<vmem>>, %arg3: memref<8x128xf32, #tpu.memory_space<vmem>>, %arg4: memref<8x128xf32, #tpu.memory_space<vmem>>) attributes {dimension_semantics = [#tpu.dimension_semantics<parallel>], iteration_bounds = array<i64: 1>, scalar_prefetch = 0 : i64, scratch_operands = 0 : i64, tpu.core_type = #tpu.core_type<tc>, window_params = [{transform_indices = @transform_0, window_bounds = array<i64: 8, 8>}, {pipeline_mode = #tpu.pipeline_mode<synchronous>, transform_indices = @transform_1, window_bounds = array<i64: 8, 128>}, {pipeline_mode = #tpu.pipeline_mode<synchronous>, transform_indices = @transform_2, window_bounds = array<i64: 8, 128>}, {transform_indices = @transform_3, window_bounds = array<i64: 8, 128>}]} {
    %c0 = arith.constant 0 : index
    %c0_0 = arith.constant 0 : index
    %0 = vector.load %arg1[%c0, %c0_0] : memref<8x8xf32, #tpu.memory_space<vmem>>, vector<8x8xf32>
    %c0_1 = arith.constant 0 : index
    %c0_2 = arith.constant 0 : index
    %1 = vector.load %arg2[%c0_1, %c0_2] : memref<8x128xf32, #tpu.memory_space<vmem>>, vector<8x128xf32>
    %cst = arith.constant dense<0.000000e+00> : vector<8x128xf32>
    %2 = tpu.matmul %0, %1, %cst {dimension_numbers = #tpu.dot_dimension_numbers<[1], [0], [0], [1], [0, 0, 1, 1], [], []>} : vector<8x8xf32>, vector<8x128xf32>, vector<8x128xf32> -> vector<8x128xf32>
    %3 = vector.shape_cast %2 : vector<8x128xf32> to vector<1x8x128xf32>
    %c0_3 = arith.constant 0 : index
    %c0_4 = arith.constant 0 : index
    %4 = vector.load %arg3[%c0_3, %c0_4] : memref<8x128xf32, #tpu.memory_space<vmem>>, vector<8x128xf32>
    %5 = vector.shape_cast %4 : vector<8x128xf32> to vector<1x8x128xf32>
    %6 = arith.addf %3, %5 : vector<1x8x128xf32>
    %7 = vector.shape_cast %6 : vector<1x8x128xf32> to vector<8x128xf32>
    %c0_5 = arith.constant 0 : index
    %c0_6 = arith.constant 0 : index
    %8 = vector.load %arg4[%c0_5, %c0_6] : memref<8x128xf32, #tpu.memory_space<vmem>>, vector<8x128xf32>
    tpu.vector_store %arg4[%c0_5, %c0_6], %7 {strides = array<i32>} : memref<8x128xf32, #tpu.memory_space<vmem>>, vector<8x128xf32>,
    return
  }
  func.func @transform_0(%arg0: i32) -> (i32, i32) {
    %c0_i32 = arith.constant 0 : i32
    %c0_i32_0 = arith.constant 0 : i32
    return %arg0, %c0_i32 : i32, i32
  }
  func.func @transform_1(%arg0: i32) -> (i32, i32) {
    %c0_i32 = arith.constant 0 : i32
    %c0_i32_0 = arith.constant 0 : i32
    %c0_i32_1 = arith.constant 0 : i32
    return %c0_i32, %c0_i32_0 : i32, i32
  }
  func.func @transform_2(%arg0: i32) -> (i32, i32) {
    %c0_i32 = arith.constant 0 : i32
    %c0_i32_0 = arith.constant 0 : i32
    %c0_i32_1 = arith.constant 0 : i32
    return %c0_i32, %c0_i32_0 : i32, i32
  }
  func.func @transform_3(%arg0: i32) -> (i32, i32) {
    %c0_i32 = arith.constant 0 : i32
    %c0_i32_0 = arith.constant 0 : i32
    return %arg0, %c0_i32 : i32, i32
  }
}

</mosaic_0001>

<bundles_post_ra>
// kernel: tpu_custom_call.1
= control target key start
LH: loop header
LB: loop body
LE: loop exit
PB: predicated region body
PF: predicated region fallthrough
CT: control target
= control target key end

     0   :  { %8 = vsyncpa [#allocation3], 0  ;;  %s327_s0 = inlined_call_operand.hbm [shape: f32[8,8], index: 0, kind: input, shape index: {}]   ;;  %s328_s1 = inlined_call_operand.hbm [shape: f32[8,128], index: 1, kind: input, shape index: {}]   ;;  %s329_s2 = inlined_call_operand.hbm [shape: f32[8,128], index: 2, kind: input, shape index: {}]   ;;  %s330_s3 = inlined_call_operand.hbm [shape: f32[8,128], index: 3, kind: output, shape index: {}]  }
   0x1   :  { %9 = vsyncpa [#allocation6], 0 }
   0x2   :  { %10 = vsyncpa [#allocation4], 0  ;;  %s253_s12 = smov [#allocation5]   ;;  %s254_s14 = smov [#allocation2]  }
   0x3   :  { %s27_s13 = sshll.u32 %s253_s12, 4  ;;  %s17_s15 = sshll.u32 %s254_s14, 4  ;;  %s28_s13 = int_to_ptr.vmem [resolvable:$true] %s27_s13  ;;  %s18_s15 = int_to_ptr.vmem [resolvable:$true] %s17_s15 }
   0x4   :  { %s159_s18 = scalar_lea.hbm %s328_s1, 128 }
   0x5   :  { %p160_p0 = scmp.ne.s32.totalorder %s328_s1, %s159_s18  ;;  %p163_p1 = scmp.lt.u32.totalorder %s159_s18, %s328_s1 }
   0x7   :  { %p165_p2 = pnand %p163_p1, %p160_p0 }
   0x9   :  { %168 = shalt.err (!%p165_p2)
}
   0xa   :  { %s169_s23 = scalar_lea.vmem %s28_s13, 128  ;;  %p174_p4 = scmp.lt.s32.totalorder %s28_s13, %s28_s13 }
   0xb   :  { %p170_p3 = scmp.ne.s32.totalorder %s28_s13, %s169_s23  ;;  %p175_p5 = scmp.lt.s32.totalorder %s169_s23, %s169_s23 }
   0xd   :  { %p176_p6 = por %p175_p5, %p174_p4 }
   0xf   :  { %p177_p7 = pnand %p176_p6, %p170_p3 }
  0x11   :  { %180 = shalt.err (!%p177_p7)
}
  0x12   :  { %30 = dma.hbm_to_vmem [thread:$0]  %s328_s1, 128, %s28_s13, [#allocation6]  }
  0x13   :  { %s181_s28 = scalar_lea.hbm %s327_s0, 128 }
  0x14   :  { %p182_p8 = scmp.ne.s32.totalorder %s327_s0, %s181_s28  ;;  %p185_p9 = scmp.lt.u32.totalorder %s181_s28, %s327_s0 }
  0x16   :  { %p187_p10 = pnand %p185_p9, %p182_p8 }
  0x18   :  { %190 = shalt.err (!%p187_p10)
}
  0x19   :  { %s191_s6 = scalar_lea.vmem %s18_s15, 128  ;;  %p196_p12 = scmp.lt.s32.totalorder %s18_s15, %s18_s15 }
  0x1a   :  { %p192_p11 = scmp.ne.s32.totalorder %s18_s15, %s191_s6  ;;  %p197_p13 = scmp.lt.s32.totalorder %s191_s6, %s191_s6 }
  0x1c   :  { %p198_p0 = por %p197_p13, %p196_p12 }
  0x1e   :  { %p199_p1 = pnand %p198_p0, %p192_p11 }
  0x20   :  { %202 = shalt.err (!%p199_p1)
}
  0x21   :  { %20 = dma.hbm_to_vmem [thread:$0]  %s327_s0, 128, %s18_s15, [#allocation3]  }
  0x22   :  { %s255_s8 = smov [#allocation7]   ;;  %s203_s12 = scalar_lea.hbm %s329_s2, 128 }
  0x23   :  { %s37_s9 = sshll.u32 %s255_s8, 4  ;;  %p204_p2 = scmp.ne.s32.totalorder %s329_s2, %s203_s12  ;;  %s38_s9 = int_to_ptr.vmem [resolvable:$true] %s37_s9 }
  0x24   :  { %p207_p3 = scmp.lt.u32.totalorder %s203_s12, %s329_s2 }
  0x26   :  { %p209_p4 = pnand %p207_p3, %p204_p2 }
  0x28   :  { %212 = shalt.err (!%p209_p4)
}
  0x29   :  { %s213_s18 = scalar_lea.vmem %s38_s9, 128  ;;  %p218_p6 = scmp.lt.s32.totalorder %s38_s9, %s38_s9 }
  0x2a   :  { %p214_p5 = scmp.ne.s32.totalorder %s38_s9, %s213_s18  ;;  %p219_p7 = scmp.lt.s32.totalorder %s213_s18, %s213_s18 }
  0x2c   :  { %p220_p8 = por %p219_p7, %p218_p6 }
  0x2e   :  { %p221_p9 = pnand %p220_p8, %p214_p5 }
  0x30   :  { %224 = shalt.err (!%p221_p9)
}
  0x31   :  { %40 = dma.hbm_to_vmem [thread:$0]  %s329_s2, 128, %s38_s9, [#allocation6]  }
  0x32   :  { %247 = dma.done.wait [#allocation3], 128  }
  0x33   :  { %248 = vsyncadd [#allocation3], 4294967168 }
  0x34   :  { %249 = dma.done.wait [#allocation6], 256  }
  0x35   :  { %250 = vsyncadd [#allocation6], 4294967040  ;;  %v256_v0 = vmov 0.0   ;;  %vm257_vm0 = vmmov 0   ;;  %vm52_vm1 = vcmask 64512   ;;  %v51_v1 = vld [vmem:[#allocation5] sm:$0xff] }
  0x36   :  { %148 = vmatprep.subr.mxu0 %v256_v0  ;;  %150 = vmatprep.mubr.msk.f32.mxu0 %vm257_vm0, %v256_v0  ;;  %v50_v2 = vld [vmem:[#allocation2] sm:$0xff]  ;;  %v126_v3 = vld [vmem:[#allocation7] sm:$0xff]  ;;  %s258_s19 = smov [#allocation8]  }
  0x37   :  { %149 = vmatpush3.msra.mxu0 %v51_v1  ;;  %s135_s20 = sshll.u32 %s258_s19, 4  ;;  %s136_s20 = int_to_ptr.vmem [resolvable:$true] %s135_s20 }
  0x38   :  { %151 = vmatmul.mubr.msk.f32.vlgmr.msra.gmra.mrb[0].mxu0 %vm52_vm1, %v50_v2  ;;  %s225_s2 = scalar_lea.vmem %s136_s20, 128  ;;  %p230_p11 = scmp.lt.s32.totalorder %s136_s20, %s136_s20 }
  0x39   :  { %p226_p10 = scmp.ne.s32.totalorder %s136_s20, %s225_s2  ;;  %p231_p12 = scmp.lt.s32.totalorder %s225_s2, %s225_s2 }
  0x3b   :  { %p232_p13 = por %p231_p12, %p230_p11 }
  0x3d   :  { %p233_p0 = pnand %p232_p13, %p226_p10 }
 0x10b   :  { %v122_v4 = vpop.f32.mrb[0].mxu0 }
 0x10c   :  { %v127_v5 = vadd.f32 %v126_v3, %v122_v4  ;;  %v152_v6 = vpop.f32.mrb[1].mxu0 }
 0x10e   :  { %128 = vst [vmem:[#allocation8] sm:$0xff] %v127_v5 }
 0x10f   :  { %236 = shalt.err (!%p233_p0)
}
 0x110   :  { %s237_s23 = scalar_lea.hbm %s330_s3, 128 }
 0x111   :  { %p238_p1 = scmp.ne.s32.totalorder %s330_s3, %s237_s23  ;;  %p241_p2 = scmp.lt.u32.totalorder %s237_s23, %s330_s3 }
 0x113   :  { %p243_p3 = pnand %p241_p2, %p238_p1 }
 0x115   :  { %246 = shalt.err (!%p243_p3)
}
 0x116   :  { %138 = dma.vmem_to_hbm [thread:$0]  %s136_s20, 128, %s330_s3, [#allocation4]  }
 0x117   :  { %251 = dma.done.wait [#allocation4], 128  }
 0x118   :  { %252 = vsyncadd [#allocation4], 4294967168 }
 0x119   :  { %142 = vsyncpa [#allocation3], 1 }
 0x11a   :  { %143 = vsyncpa [#allocation6], 1 }
 0x11b   :  { %144 = vsyncpa [#allocation4], 1 }

</bundles_post_ra>
